<compile_context>
chip_gen: v7x
topology: tpu7x:2x2x1
jax: 0.10.0
libtpu: 0.0.40
codegen_flags: <defaults>
</compile_context>

<pallas_src>
import jax
import jax.numpy as jnp
from jax.experimental import pallas as pl
from jax.experimental.pallas import tpu as pltpu


def _round_up(x, m):
    return (x + m - 1) // m * m


def item_kernel(year_idx_ref, genre_ref, wy_ref, wg_ref, out_ref):
    """Year one-hot embedding + normalized genre linear for one batch tile."""
    tb = genre_ref.shape[0]
    num_year, d = wy_ref.shape

    # ---- year embedding as a one-hot gather on the MXU ----
    year_ids = year_idx_ref[...]                                    # (tb, 1) i32
    iota = jax.lax.broadcasted_iota(jnp.int32, (tb, num_year), 1)   # (tb, num_year)
    onehot = (iota == year_ids).astype(jnp.float32)
    year_part = jnp.dot(onehot, wy_ref[...],
                        preferred_element_type=jnp.float32)         # (tb, d)

    # ---- genre linear: cast in-kernel, fold 1/rowsum into the narrow LHS ----
    g = genre_ref[...].astype(jnp.float32)                          # (tb, G)
    denom = jnp.sum(g, axis=1, keepdims=True)                       # (tb, 1)
    # Guard all-zero rows (batch padding / degenerate input); PyTorch would NaN.
    safe = jnp.where(denom == 0.0, 1.0, denom)
    g_scaled = g * pl.reciprocal(safe, approx=False)                # (tb, G)
    genre_part = jnp.dot(g_scaled, wg_ref[...],
                         preferred_element_type=jnp.float32)        # (tb, d)

    # ---- single store of the exact (tb, 2*d) output tile (no lane padding) ----
    out_ref[...] = jnp.concatenate([year_part, genre_part], axis=1)


def item_forward(year_idx, genre_idx, year_table, genre_weight, *, block_b=4096):
    """year_idx: (B,) int; genre_idx: (B, G) multi-hot (any int dtype).

    year_table:   (num_year, D) f32  (nn.Embedding weight)
    genre_weight: (G, D)        f32  (torch Linear weight (D, G) transposed)
    Returns (B, 2*D) f32.
    """
    B = int(year_idx.shape[0])
    num_year, D = year_table.shape
    G = genre_weight.shape[0]
    out_w = 2 * D

    # Sublane granularity required by the narrowest blocked input dtype
    # (int8 genre -> 32, int32/f32 -> 8).
    mult = max(8, 32 // genre_idx.dtype.itemsize)
    block_b = max(_round_up(block_b, mult), mult)

    if B <= 2 * mult:
        # Tiny batch: one full-extent tile, no padding, no extra HBM passes.
        tb, b_pad = B, B
    else:
        # Keep >= 2 grid steps so both v7x TensorCores get work; cap by block_b.
        half = _round_up(-(-B // 2), mult)
        tb = min(block_b, half)
        b_pad = _round_up(B, tb)

    year_idx_2d = year_idx.reshape(B, 1).astype(jnp.int32)
    genre_in = genre_idx                                  # native dtype, cast in-kernel
    if b_pad != B:
        pad = b_pad - B
        year_idx_2d = jnp.pad(year_idx_2d, ((0, pad), (0, 0)))
        genre_in = jnp.pad(genre_in, ((0, pad), (0, 0)))

    out_full = pl.pallas_call(
        item_kernel,
        out_shape=jax.ShapeDtypeStruct((b_pad, out_w), jnp.float32),
        grid_spec=pltpu.PrefetchScalarGridSpec(
            num_scalar_prefetch=0,
            grid=(b_pad // tb,),
            in_specs=[
                pl.BlockSpec((tb, 1), lambda i: (i, 0)),          # year ids tile
                pl.BlockSpec((tb, G), lambda i: (i, 0)),          # genre tile (int8 ok)
                pl.BlockSpec((num_year, D), lambda i: (0, 0)),    # year table, resident
                pl.BlockSpec((G, D), lambda i: (0, 0)),           # genre weight, resident
            ],
            out_specs=pl.BlockSpec((tb, out_w), lambda i: (i, 0)),  # exact width, no pad
        ),
        compiler_params=pltpu.CompilerParams(
            dimension_semantics=("parallel",),   # batch tiles shard across TCs (v7x)
        ),
    )(year_idx_2d, genre_in, year_table.astype(jnp.float32),
      genre_weight.astype(jnp.float32))

    return out_full if b_pad == B else out_full[:B]


if __name__ == "__main__":
    # Config (small, consistent with the module's __init__).
    B = 8
    num_year = 16
    num_genre = 8
    embedding_dim = 32

    key = jax.random.PRNGKey(0)
    k_tab, k_w, k_year, k_genre = jax.random.split(key, 4)

    # Deterministic synthetic parameters (not a checkpoint load).
    year_table = jax.random.normal(k_tab, (num_year, embedding_dim), jnp.float32)
    bound = 1.0 / jnp.sqrt(num_genre)
    genre_weight = jax.random.uniform(
        k_w, (num_genre, embedding_dim), jnp.float32, -bound, bound
    )  # = torch Linear weight (D, G) transposed

    # Example inputs.  Genre multi-hot stored as int8 (native narrow dtype,
    # cast to f32 inside the kernel).
    year_idx = jax.random.randint(k_year, (B,), 0, num_year, jnp.int32)
    genre_idx = jax.random.bernoulli(k_genre, 0.4, (B, num_genre)).astype(jnp.int8)
    # Guarantee at least one genre per row (real-data invariant, avoids 0/0).
    genre_idx = genre_idx.at[:, 0].set(1)

    out = item_forward(year_idx, genre_idx, year_table, genre_weight)
    jax.block_until_ready(out)

    # Pure-JAX reference check.
    year_ref = year_table[year_idx]
    g = genre_idx.astype(jnp.float32)
    genre_ref = (g @ genre_weight) / jnp.sum(g, axis=1, keepdims=True)
    ref = jnp.concatenate([year_ref, genre_ref], axis=1)
    assert out.shape == (B, 2 * embedding_dim)
    assert jnp.allclose(out, ref, atol=1e-5, rtol=1e-5)

    print("KERNEL_OK")
</pallas_src>

<mosaic_0001>
module attributes {stable_mosaic.version = 11 : i64} {
  func.func @item_kernel(%arg0: i32, %arg1: memref<8x1xi32, #tpu.memory_space<vmem>>, %arg2: memref<8x8xi8, #tpu.memory_space<vmem>>, %arg3: memref<16x32xf32, #tpu.memory_space<vmem>>, %arg4: memref<8x32xf32, #tpu.memory_space<vmem>>, %arg5: memref<8x64xf32, #tpu.memory_space<vmem>>) attributes {dimension_semantics = [#tpu.dimension_semantics<parallel>], iteration_bounds = array<i64: 1>, scalar_prefetch = 0 : i64, scratch_operands = 0 : i64, tpu.core_type = #tpu.core_type<tc>, window_params = [{transform_indices = @transform_0, window_bounds = array<i64: 8, 1>}, {transform_indices = @transform_1, window_bounds = array<i64: 8, 8>}, {pipeline_mode = #tpu.pipeline_mode<synchronous>, transform_indices = @transform_2, window_bounds = array<i64: 16, 32>}, {pipeline_mode = #tpu.pipeline_mode<synchronous>, transform_indices = @transform_3, window_bounds = array<i64: 8, 32>}, {transform_indices = @transform_4, window_bounds = array<i64: 8, 64>}]} {
    %c0 = arith.constant 0 : index
    %c0_0 = arith.constant 0 : index
    %0 = vector.load %arg1[%c0, %c0_0] : memref<8x1xi32, #tpu.memory_space<vmem>>, vector<8x1xi32>
    %1 = tpu.iota {dimensions = array<i32: 1>} : vector<8x16xi32>
    %2 = vector.broadcast %0 : vector<8x1xi32> to vector<8x16xi32>
    %3 = arith.cmpi eq, %1, %2 : vector<8x16xi32>
    %4 = arith.extui %3 : vector<8x16xi1> to vector<8x16xi32>
    %5 = arith.sitofp %4 : vector<8x16xi32> to vector<8x16xf32>
    %c0_1 = arith.constant 0 : index
    %c0_2 = arith.constant 0 : index
    %6 = vector.load %arg3[%c0_1, %c0_2] : memref<16x32xf32, #tpu.memory_space<vmem>>, vector<16x32xf32>
    %cst = arith.constant dense<0.000000e+00> : vector<8x32xf32>
    %7 = tpu.matmul %5, %6, %cst {dimension_numbers = #tpu.dot_dimension_numbers<[1], [0], [0], [1], [0, 0, 1, 1], [], []>} : vector<8x16xf32>, vector<16x32xf32>, vector<8x32xf32> -> vector<8x32xf32>
    %c0_3 = arith.constant 0 : index
    %c0_4 = arith.constant 0 : index
    %8 = vector.load %arg2[%c0_3, %c0_4] : memref<8x8xi8, #tpu.memory_space<vmem>>, vector<8x8xi8>
    %9 = arith.sitofp %8 : vector<8x8xi8> to vector<8x8xf32>
    %cst_5 = arith.constant dense<0.000000e+00> : vector<8xf32>
    %10 = vector.multi_reduction <add>, %9, %cst_5 [1] : vector<8x8xf32> to vector<8xf32>
    %11 = vector.shape_cast %10 : vector<8xf32> to vector<8x1xf32>
    %cst_6 = arith.constant 0.000000e+00 : f32
    %12 = vector.broadcast %cst_6 : f32 to vector<8x1xf32>
    %13 = arith.cmpf oeq, %11, %12 : vector<8x1xf32>
    %cst_7 = arith.constant 1.000000e+00 : f32
    %14 = vector.broadcast %cst_7 : f32 to vector<8x1xf32>
    %15 = arith.select %13, %14, %11 : vector<8x1xi1>, vector<8x1xf32>
    %16 = tpu.reciprocal %15 : vector<8x1xf32> -> vector<8x1xf32>
    %17 = vector.broadcast %16 : vector<8x1xf32> to vector<8x8xf32>
    %18 = arith.mulf %9, %17 : vector<8x8xf32>
    %c0_8 = arith.constant 0 : index
    %c0_9 = arith.constant 0 : index
    %19 = vector.load %arg4[%c0_8, %c0_9] : memref<8x32xf32, #tpu.memory_space<vmem>>, vector<8x32xf32>
    %cst_10 = arith.constant dense<0.000000e+00> : vector<8x32xf32>
    %20 = tpu.matmul %18, %19, %cst_10 {dimension_numbers = #tpu.dot_dimension_numbers<[1], [0], [0], [1], [0, 0, 1, 1], [], []>} : vector<8x8xf32>, vector<8x32xf32>, vector<8x32xf32> -> vector<8x32xf32>
    %21 = tpu.concatenate %7, %20 in 1 : vector<8x32xf32>, vector<8x32xf32> -> vector<8x64xf32>
    %c0_11 = arith.constant 0 : index
    %c0_12 = arith.constant 0 : index
    %22 = vector.load %arg5[%c0_11, %c0_12] : memref<8x64xf32, #tpu.memory_space<vmem>>, vector<8x64xf32>
    tpu.vector_store %arg5[%c0_11, %c0_12], %21 {strides = array<i32>} : memref<8x64xf32, #tpu.memory_space<vmem>>, vector<8x64xf32>,
    return
  }
  func.func @transform_0(%arg0: i32) -> (i32, i32) {
    %c0_i32 = arith.constant 0 : i32
    %c0_i32_0 = arith.constant 0 : i32
    return %arg0, %c0_i32 : i32, i32
  }
  func.func @transform_1(%arg0: i32) -> (i32, i32) {
    %c0_i32 = arith.constant 0 : i32
    %c0_i32_0 = arith.constant 0 : i32
    return %arg0, %c0_i32 : i32, i32
  }
  func.func @transform_2(%arg0: i32) -> (i32, i32) {
    %c0_i32 = arith.constant 0 : i32
    %c0_i32_0 = arith.constant 0 : i32
    %c0_i32_1 = arith.constant 0 : i32
    return %c0_i32, %c0_i32_0 : i32, i32
  }
  func.func @transform_3(%arg0: i32) -> (i32, i32) {
    %c0_i32 = arith.constant 0 : i32
    %c0_i32_0 = arith.constant 0 : i32
    %c0_i32_1 = arith.constant 0 : i32
    return %c0_i32, %c0_i32_0 : i32, i32
  }
  func.func @transform_4(%arg0: i32) -> (i32, i32) {
    %c0_i32 = arith.constant 0 : i32
    %c0_i32_0 = arith.constant 0 : i32
    return %arg0, %c0_i32 : i32, i32
  }
}

</mosaic_0001>

<bundles_post_ra>
// kernel: tpu_custom_call.1
= control target key start
LH: loop header
LB: loop body
LE: loop exit
PB: predicated region body
PF: predicated region fallthrough
CT: control target
= control target key end

     0   :  { %9 = vsyncpa [#allocation3], 0  ;;  %s422_s0 = inlined_call_operand.vmem [shape: s32[8,1], index: 0, kind: input, shape index: {}]   ;;  %s423_s1 = inlined_call_operand.hbm [shape: s8[8,8], index: 1, kind: input, shape index: {}]   ;;  %s424_s2 = inlined_call_operand.vmem [shape: f32[16,32], index: 2, kind: input, shape index: {}]   ;;  %s425_s3 = inlined_call_operand.hbm [shape: f32[8,32], index: 3, kind: input, shape index: {}]   ;;  %s426_s4 = inlined_call_operand.hbm [shape: f32[8,64], index: 4, kind: output, shape index: {}]  }
   0x1   :  { %10 = vsyncpa [#allocation6], 0 }
   0x2   :  { %11 = vsyncpa [#allocation4], 0  ;;  %s342_s15 = smov [#allocation2]   ;;  %s343_s17 = smov [#allocation5]  }
   0x3   :  { %s20_s16 = sshll.u32 %s342_s15, 4  ;;  %s32_s18 = sshll.u32 %s343_s17, 4  ;;  %s21_s16 = int_to_ptr.vmem [resolvable:$true] %s20_s16  ;;  %s33_s18 = int_to_ptr.vmem [resolvable:$true] %s32_s18 }
   0x4   :  { %s270_s21 = scalar_lea.hbm %s423_s1, 32 }
   0x5   :  { %p271_p0 = scmp.ne.s32.totalorder %s423_s1, %s270_s21  ;;  %p274_p1 = scmp.lt.u32.totalorder %s270_s21, %s423_s1 }
   0x7   :  { %p276_p2 = pnand %p274_p1, %p271_p0 }
   0x9   :  { %279 = shalt.err (!%p276_p2)
}
   0xa   :  { %s280_s26 = scalar_lea.vmem %s21_s16, 32  ;;  %p285_p4 = scmp.lt.s32.totalorder %s21_s16, %s21_s16 }
   0xb   :  { %p281_p3 = scmp.ne.s32.totalorder %s21_s16, %s280_s26  ;;  %p286_p5 = scmp.lt.s32.totalorder %s280_s26, %s280_s26 }
   0xd   :  { %p287_p6 = por %p286_p5, %p285_p4 }
   0xf   :  { %p288_p7 = pnand %p287_p6, %p281_p3 }
  0x11   :  { %291 = shalt.err (!%p288_p7)
}
  0x12   :  { %23 = dma.hbm_to_vmem [thread:$0]  %s423_s1, 32, %s21_s16, [#allocation3]  }
  0x13   :  { %s292_s5 = scalar_lea.hbm %s425_s3, 128 }
  0x14   :  { %p293_p8 = scmp.ne.s32.totalorder %s425_s3, %s292_s5  ;;  %p296_p9 = scmp.lt.u32.totalorder %s292_s5, %s425_s3 }
  0x16   :  { %p298_p10 = pnand %p296_p9, %p293_p8 }
  0x18   :  { %301 = shalt.err (!%p298_p10)
}
  0x19   :  { %s302_s10 = scalar_lea.vmem %s33_s18, 128  ;;  %p307_p12 = scmp.lt.s32.totalorder %s33_s18, %s33_s18 }
  0x1a   :  { %p303_p11 = scmp.ne.s32.totalorder %s33_s18, %s302_s10  ;;  %p308_p13 = scmp.lt.s32.totalorder %s302_s10, %s302_s10 }
  0x1c   :  { %p309_p0 = por %p308_p13, %p307_p12 }
  0x1e   :  { %p310_p1 = pnand %p309_p0, %p303_p11 }
  0x20   :  { %313 = shalt.err (!%p310_p1)
}
  0x21   :  { %35 = dma.hbm_to_vmem [thread:$0]  %s425_s3, 128, %s33_s18, [#allocation6]  }
  0x22   :  { %336 = dma.done.wait [#allocation3], 32  }
  0x23   :  { %337 = vsyncadd [#allocation3], 4294967264 }
  0x24   :  { %338 = dma.done.wait [#allocation6], 128  }
  0x25   :  { %339 = vsyncadd [#allocation6], 4294967168  ;;  %v344_v0 = vmov 0   ;;  %v127_v1 = vld [vmem:[#allocation2] sm:$0x3]  ;;  %vm130_vm0 = vcmask 64512   ;;  %v43_v13 = vlaneseq }
  0x26   :  { %267 = vset.pattern.permute.xlu0 %v344_v0  ;;  %v128_v2 = vunpack.c.0.s8 %v127_v1  ;;  %v138_v5 = vld [vmem:[#allocation5] sm:$0xff]  ;;  %v345_v6 = vmov 0.0   ;;  %vm346_vm1 = vmmov 0   ;;  %v52_v9 = vld [vmem:[%s424_s2 + $0x8] sm:$0xff]  ;;  %v347_v10 = vmov 0.0|0.0  }
  0x27   :  { %251 = vmatprep.subr.mxu1 %v345_v6  ;;  %253 = vmatprep.mubr.msk.f32.mxu1 %vm346_vm1, %v345_v6  ;;  %v42_v7 = vld [vmem:[%s422_s0] sm:$0xff]  ;;  %v44_v15 = vand.u32 127, %v43_v13  ;;  %vm53_vm3 = vcmask 130048   ;;  %s348_s0 = smov 32   ;;  %vm216_vm5 = vcmask 261120   ;;  %vm218_vm6 = vcmask 523264  }
  0x28   :  { %v129_v3 = vcvt.s32.f32 %v128_v2  ;;  %252 = vmatpush3.msra.mxu1 %v138_v5  ;;  %248 = vmatprep.mubr.msk.f32.mxu0 %vm346_vm1, %v345_v6  ;;  %v51_v8 = vld [vmem:[%s424_s2] sm:$0xff]  ;;  %s349_s2 = smov [#allocation7]  }
  0x29   :  { %256 = vmatprep.subr.bf16.mxu0 %v347_v10  ;;  %v257_v11 = vpack.c.bf16 %v52_v9, %v51_v8  ;;  %s226_s17 = sshll.u32 %s349_s2, 4  ;;  %s227_s17 = int_to_ptr.vmem [resolvable:$true] %s226_s17 }
  0x2a   :  { %v131_v4 = vsel %vm130_vm0, %v129_v3, 0.0  ;;  %s314_s18 = scalar_lea.vmem %s227_s17, 128  ;;  %p319_p3 = scmp.lt.s32.totalorder %s227_s17, %s227_s17 }
  0x2b   :  { %132 = vadd.xlane.f32.xlu0 %v131_v4  ;;  %258 = vmatpush3.bf16.msra.mxu0 %v257_v11  ;;  %p315_p2 = scmp.ne.s32.totalorder %s227_s17, %s314_s18  ;;  %p320_p4 = scmp.lt.s32.totalorder %s314_s18, %s314_s18 }
  0x2d   :  { %p321_p5 = por %p320_p4, %p319_p3 }
  0x2f   :  { %p322_p6 = pnand %p321_p5, %p315_p2 }
  0x41   :  { %46 = vperm.xlu0 %267, %v42_v7  }
  0xb8   :  { %v133_v12 = vpop.xlane.xlu0 %132 }
  0xb9   :  { %vm134_vm2 = vcmp.eq.f32.partialorder %v133_v12, 0.0 }
  0xba   :  { %v135_v14 = vsel %vm134_vm2, 1.0, %v133_v12 }
  0xbb   :  { %268 = vrcp.f32 %v135_v14 }
  0xc0   :  { %v47_v16 = vpop.permute.xlu0 %46 }
  0xc1   :  { %vm48_vm4 = vcmp.eq.s32.totalorder %v44_v15, %v47_v16 }
  0xc2   :  { %v236_v17 = vsel %vm48_vm4, 1.0, %v345_v6 }
  0xc3   :  { %249 = vmatmul.mubr.msk.f32.vlgmr.msra.gmra.mrb[0].mxu0 %vm53_vm3, %v236_v17 }
  0xc5   :  { %v269_v18 = vpop.eup %268 }
  0xc6   :  { %v137_v19 = vmul.f32 %v269_v18, %v129_v3 }
  0xc8   :  { %254 = vmatmul.mubr.msk.f32.vlgmr.msra.gmra.mrb[0].mxu1 %vm130_vm0, %v137_v19 }
 0x196   :  { %v123_v20 = vpop.f32.mrb[0].mxu0 }
 0x197   :  { %v250_v21 = vpop.f32.mrb[1].mxu0 }
 0x19b   :  { %v208_v22 = vpop.f32.mrb[0].mxu1 }
 0x19c   :  { %213 = vrot.lane.b32.xlu1 %v208_v22, %s348_s0  ;;  %v255_v23 = vpop.f32.mrb[1].mxu1 }
 0x20e   :  { %v214_v24 = vpop.permute.xlu1 %213 }
 0x20f   :  { %v217_v25 = vsel %vm216_vm5, %v123_v20, %v214_v24 }
 0x210   :  { %219 = vst.msk [vmem:[#allocation7] sm:$0xff] %vm218_vm6, %v217_v25 }
 0x211   :  { %325 = shalt.err (!%p322_p6)
}
 0x212   :  { %s326_s21 = scalar_lea.hbm %s426_s4, 128 }
 0x213   :  { %p327_p7 = scmp.ne.s32.totalorder %s426_s4, %s326_s21  ;;  %p330_p8 = scmp.lt.u32.totalorder %s326_s21, %s426_s4 }
 0x215   :  { %p332_p9 = pnand %p330_p8, %p327_p7 }
 0x217   :  { %335 = shalt.err (!%p332_p9)
}
 0x218   :  { %229 = dma.vmem_to_hbm [thread:$0]  %s227_s17, 128, %s426_s4, [#allocation4]  }
 0x219   :  { %340 = dma.done.wait [#allocation4], 128  }
 0x21a   :  { %341 = vsyncadd [#allocation4], 4294967168 }
 0x21b   :  { %233 = vsyncpa [#allocation3], 1 }
 0x21c   :  { %234 = vsyncpa [#allocation6], 1 }
 0x21d   :  { %235 = vsyncpa [#allocation4], 1 }

</bundles_post_ra>
